<compile_context>
chip_gen: v6e
topology: v6e:2x2x1
jax: 0.10.0
libtpu: 0.0.40
codegen_flags: <defaults>
</compile_context>

<pallas_src>
import functools

import numpy as np

import jax
import jax.numpy as jnp
from jax import lax
from jax.experimental import pallas as pl
from jax.experimental.pallas import tpu as pltpu


@functools.lru_cache(maxsize=1)
def _hw_config():
    """Returns (pipelined-input budget bytes, vmem_limit_bytes, num_tensorcores)."""
    phys = 64 * 1024 * 1024                       # conservative fallback (v7x-sized)
    try:
        info = pltpu.get_tpu_info()
        p = int(getattr(info, "vmem_capacity_bytes", 0) or 0)
        if p > 0:
            phys = p
    except Exception:
        pass
    if phys >= 100 * 1024 * 1024:                 # v5e / v6e: 128 MiB physical VMEM
        budget, limit = 32 * 1024 * 1024, 64 * 1024 * 1024
    else:                                         # v7x: 64 MiB physical VMEM
        budget, limit = 24 * 1024 * 1024, 48 * 1024 * 1024

    cores = 1
    try:
        kind = getattr(jax.devices()[0], "device_kind", "").lower()
        if "v7" in kind:                          # dual-TensorCore chips
            cores = 2
    except Exception:
        pass
    return budget, limit, cores


@functools.partial(
    jax.jit,
    static_argnames=("budget_bytes", "vmem_limit", "num_cores", "core_parallel"),
)
def _dimred_mse_pallas(output, target, mask, *, budget_bytes, vmem_limit,
                       num_cores, core_parallel):
    n, d = output.shape
    dm = mask.shape[-1]
    if dm != d:
        # Lane-dense repack requested by the caller (mask already tiled to dm
        # lanes and (n*d) % dm == 0 guaranteed by the caller).
        n = (n * d) // dm
        d = dm
        output = output.reshape(n, d)
        target = target.reshape(n, d)

    # ---- Tile selection: biggest row tile whose double-buffered native-dtype --
    # ---- inputs PLUS the in-kernel f32 temporaries fit the budget.          --
    itemsize = max(jnp.dtype(output.dtype).itemsize, jnp.dtype(target.dtype).itemsize)
    d_lanes = pl.cdiv(d, 128) * 128                       # padded lane width in VMEM
    # 2 inputs x 2 pipeline buffers at native dtype + ~3 f32 elementwise temps.
    per_row_bytes = 2 * 2 * d_lanes * itemsize + 3 * d_lanes * 4
    tile_n = budget_bytes // per_row_bytes
    tile_n = min(tile_n, 16384)
    tile_n = max(tile_n, 8)
    tile_n = (tile_n // 8) * 8                            # keep (8,128) tiling legal
    n_pad8 = pl.cdiv(n, 8) * 8
    tile_n = min(tile_n, n_pad8)                          # never bigger than needed
    # TODO(synk): add a lane-axis grid dimension for extremely wide D where even an
    # 8-row double-buffered block would exceed vmem_limit_bytes / physical VMEM.

    num_tiles = pl.cdiv(n, tile_n)
    # Only split the leading axis on multi-TensorCore chips.
    num_splits = num_cores if (num_cores > 1 and num_tiles >= num_cores) else 1
    steps = pl.cdiv(num_tiles, num_splits)

    # Row masking is only needed for a ragged tail tile or clamped duplicate tiles.
    needs_row_mask = (n % tile_n != 0) or (num_tiles % num_splits != 0)

    def row_block(c, i):
        t = c * steps + i
        # Clamp duplicate/overhang tiles in-bounds; their rows are masked to 0
        # inside the kernel, so they contribute nothing.
        return (jnp.minimum(t, num_tiles - 1), 0)

    def kernel(out_ref, tgt_ref, mask_ref, loss_ref, acc_ref):
        i = pl.program_id(1)

        @pl.when(i == 0)
        def _init():
            acc_ref[...] = jnp.zeros_like(acc_ref)

        diff = out_ref[...].astype(jnp.float32) - tgt_ref[...].astype(jnp.float32)
        sq = diff * diff                       # column mask deferred to the finalize

        if needs_row_mask:
            tile_idx = pl.program_id(0) * steps + i

            # Tail tile and clamped duplicate tiles (tile_idx >= num_tiles) pay
            # for iota + select; everything past row n contributes zero.
            @pl.when(tile_idx >= num_tiles - 1)
            def _tail():
                row_ids = tile_idx * tile_n + lax.broadcasted_iota(
                    jnp.int32, (tile_n, 1), 0)
                masked = jnp.where(row_ids < n, sq, 0.0)
                acc_ref[...] += masked.reshape(tile_n // 8, 8, d).sum(axis=0)

            # Full tiles: plain unmasked accumulate (no iota, no select).
            @pl.when(tile_idx < num_tiles - 1)
            def _full():
                acc_ref[...] += sq.reshape(tile_n // 8, 8, d).sum(axis=0)
        else:
            acc_ref[...] += sq.reshape(tile_n // 8, 8, d).sum(axis=0)

        @pl.when(i == pl.num_programs(1) - 1)
        def _fini():
            # Apply the column mask exactly once, then a single XLU reduce.
            total = jnp.sum(acc_ref[...] * mask_ref[...])
            loss_ref[...] = jnp.broadcast_to(total, (1, 8, 128))

    if num_splits > 1 and core_parallel and hasattr(pltpu, "CORE_PARALLEL"):
        dims_sem = (pltpu.CORE_PARALLEL, pltpu.ARBITRARY)   # genuinely shard across TCs
    elif num_splits > 1:
        dims_sem = ("parallel", "arbitrary")
    else:
        dims_sem = ("arbitrary", "arbitrary")

    partials = pl.pallas_call(
        kernel,
        out_shape=jax.ShapeDtypeStruct((num_splits, 8, 128), jnp.float32),
        grid_spec=pltpu.PrefetchScalarGridSpec(
            num_scalar_prefetch=0,
            grid=(num_splits, steps),
            in_specs=[
                pl.BlockSpec((tile_n, d), row_block),
                pl.BlockSpec((tile_n, d), row_block),
                pl.BlockSpec((1, d), lambda c, i: (0, 0)),
            ],
            out_specs=pl.BlockSpec((1, 8, 128), lambda c, i: (c, 0, 0)),
            scratch_shapes=[pltpu.VMEM((8, d), jnp.float32)],
        ),
        compiler_params=pltpu.CompilerParams(
            dimension_semantics=dims_sem,
            vmem_limit_bytes=vmem_limit,
        ),
    )(output, target, mask)

    # One tiny scalar per split; sum on the wrapper side.
    return jnp.sum(partials[:, 0, 0])


class DimredMSELossPallas:
    """JAX/Pallas port of dimred_MSELoss."""

    def __init__(self, dimension_activity):
        self.dimension_activity = np.asarray(list(dimension_activity), dtype=np.int64)
        self._mask_cache = {}
        self._core_parallel_ok = None   # tri-state: None=untried, True/False=probed

    def _mask_for(self, d, rep):
        key = (d, rep)
        m = self._mask_cache.get(key)
        if m is None:
            base = np.zeros((1, d), dtype=np.float32)
            base[0, self.dimension_activity] = 1.0
            m = jnp.asarray(np.tile(base, (1, rep)))
            self._mask_cache[key] = m
        return m

    def __call__(self, output, target):
        if output.shape[0] == 0:
            return jnp.zeros((), dtype=jnp.float32)

        n, d = output.shape
        # Lane-dense repack for narrow feature dims: (N, D) -> (N*D/128, 128).
        rep = 1
        if d < 128 and 128 % d == 0 and (n * d) % 128 == 0:
            rep = 128 // d
        # TODO(synk): generalize the repack (period lcm(D,128)/128 row-phase masks)
        # for D values like 40/48/96 that currently run at reduced lane utilization.
        mask = self._mask_for(d, rep)

        budget, limit, cores = _hw_config()

        if cores >= 2 and self._core_parallel_ok is not False:
            try:
                res = _dimred_mse_pallas(
                    output, target, mask, budget_bytes=budget, vmem_limit=limit,
                    num_cores=cores, core_parallel=True)
                if self._core_parallel_ok is None:
                    jax.block_until_ready(res)   # probe once; cache the outcome
                    self._core_parallel_ok = True
                return res
            except Exception:
                self._core_parallel_ok = False   # fall back to plain "parallel"

        return _dimred_mse_pallas(
            output, target, mask, budget_bytes=budget, vmem_limit=limit,
            num_cores=cores, core_parallel=False)


if __name__ == "__main__":
    key = jax.random.PRNGKey(0)
    k1, k2, k3, k4, k5, k6 = jax.random.split(key, 6)

    # --- Test 1: f32, lane-dense repack path (D=32 -> 128 lanes) -------------
    N, D = 16, 32
    dims = [0, 3, 5, 7, 10, 31]
    output = jax.random.normal(k1, (N, D), dtype=jnp.float32)
    target = jax.random.normal(k2, (N, D), dtype=jnp.float32)

    loss_fn = DimredMSELossPallas(dims)
    loss = jax.block_until_ready(loss_fn(output, target))

    d_idx = jnp.asarray(dims)
    ref = jnp.sum((output[:, d_idx] - target[:, d_idx]) ** 2)
    assert jnp.allclose(loss, ref, rtol=1e-5, atol=1e-5), (loss, ref)

    # --- Test 2: bf16 native-dtype streaming + non-8-divisible N (row mask) --
    N2, D2 = 50, 40
    dims2 = [1, 2, 17, 39]
    output2 = jax.random.normal(k3, (N2, D2), dtype=jnp.bfloat16)
    target2 = jax.random.normal(k4, (N2, D2), dtype=jnp.bfloat16)

    loss_fn2 = DimredMSELossPallas(dims2)
    loss2 = jax.block_until_ready(loss_fn2(output2, target2))

    d_idx2 = jnp.asarray(dims2)
    o32 = output2.astype(jnp.float32)
    t32 = target2.astype(jnp.float32)
    ref2 = jnp.sum((o32[:, d_idx2] - t32[:, d_idx2]) ** 2)
    assert jnp.allclose(loss2, ref2, rtol=1e-4, atol=1e-4), (loss2, ref2)

    # --- Test 3: force the multi-tile path (tiny budget -> many tiles,   -----
    # --- gated tail masking on the last ragged tile).                    -----
    N3, D3 = 300, 128
    dims3 = [0, 1, 2, 64, 127]
    output3 = jax.random.normal(k5, (N3, D3), dtype=jnp.float32)
    target3 = jax.random.normal(k6, (N3, D3), dtype=jnp.float32)
    base3 = np.zeros((1, D3), dtype=np.float32)
    base3[0, dims3] = 1.0
    mask3 = jnp.asarray(base3)

    loss3 = jax.block_until_ready(_dimred_mse_pallas(
        output3, target3, mask3, budget_bytes=64 * 1024,
        vmem_limit=32 * 1024 * 1024, num_cores=1, core_parallel=False))
    d_idx3 = jnp.asarray(dims3)
    ref3 = jnp.sum((output3[:, d_idx3] - target3[:, d_idx3]) ** 2)
    assert jnp.allclose(loss3, ref3, rtol=1e-5, atol=1e-4), (loss3, ref3)

    # --- Test 4: 2-way split of an odd tile count (clamped duplicate tile ----
    # --- must contribute zero via the >= gated row mask).                 ----
    loss4 = jax.block_until_ready(_dimred_mse_pallas(
        output3, target3, mask3, budget_bytes=64 * 1024,
        vmem_limit=32 * 1024 * 1024, num_cores=2, core_parallel=False))
    assert jnp.allclose(loss4, ref3, rtol=1e-5, atol=1e-4), (loss4, ref3)

    print("KERNEL_OK")
</pallas_src>

<mosaic_0001>
module attributes {stable_mosaic.version = 11 : i64} {
  func.func @kernel(%arg0: i32, %arg1: i32, %arg2: memref<8x128xf32, #tpu.memory_space<vmem>>, %arg3: memref<8x128xf32, #tpu.memory_space<vmem>>, %arg4: memref<1x128xf32, #tpu.memory_space<vmem>>, %arg5: memref<1x8x128xf32, #tpu.memory_space<vmem>>, %arg6: memref<8x128xf32, #tpu.memory_space<vmem>>) attributes {dimension_semantics = [#tpu.dimension_semantics<arbitrary>, #tpu.dimension_semantics<arbitrary>], iteration_bounds = array<i64: 1, 1>, scalar_prefetch = 0 : i64, scratch_operands = 1 : i64, tpu.core_type = #tpu.core_type<tc>, window_params = [{transform_indices = @transform_0, window_bounds = array<i64: 8, 128>}, {transform_indices = @transform_1, window_bounds = array<i64: 8, 128>}, {pipeline_mode = #tpu.pipeline_mode<synchronous>, transform_indices = @transform_2, window_bounds = array<i64: 1, 128>}, {transform_indices = @transform_3, window_bounds = array<i64: 1, 8, 128>}]} {
    %c0_i32 = arith.constant 0 : i32
    %0 = arith.cmpi eq, %arg1, %c0_i32 : i32
    %1 = arith.extui %0 : i1 to i32
    %c0_i32_0 = arith.constant 0 : i32
    %2 = arith.cmpi ne, %1, %c0_i32_0 : i32
    scf.if %2 {
      %cst = arith.constant 0.000000e+00 : f32
      %18 = vector.broadcast %cst : f32 to vector<8x128xf32>
      %c0_10 = arith.constant 0 : index
      %c0_11 = arith.constant 0 : index
      %19 = vector.load %arg6[%c0_10, %c0_11] : memref<8x128xf32, #tpu.memory_space<vmem>>, vector<8x128xf32>
      tpu.vector_store %arg6[%c0_10, %c0_11], %18 {strides = array<i32>} : memref<8x128xf32, #tpu.memory_space<vmem>>, vector<8x128xf32>,
    } else {
    }
    %c0 = arith.constant 0 : index
    %c0_1 = arith.constant 0 : index
    %3 = vector.load %arg2[%c0, %c0_1] : memref<8x128xf32, #tpu.memory_space<vmem>>, vector<8x128xf32>
    %c0_2 = arith.constant 0 : index
    %c0_3 = arith.constant 0 : index
    %4 = vector.load %arg3[%c0_2, %c0_3] : memref<8x128xf32, #tpu.memory_space<vmem>>, vector<8x128xf32>
    %5 = arith.subf %3, %4 : vector<8x128xf32>
    %6 = arith.mulf %5, %5 : vector<8x128xf32>
    %c1_i32 = arith.constant 1 : i32
    %7 = arith.muli %arg0, %c1_i32 : i32
    %8 = arith.addi %7, %arg1 : i32
    %c0_i32_4 = arith.constant 0 : i32
    %9 = arith.cmpi sge, %8, %c0_i32_4 : i32
    %10 = arith.extui %9 : i1 to i32
    %c0_i32_5 = arith.constant 0 : i32
    %11 = arith.cmpi ne, %10, %c0_i32_5 : i32
    scf.if %11 {
      %c8_i32 = arith.constant 8 : i32
      %18 = arith.muli %8, %c8_i32 : i32
      %19 = tpu.iota {dimensions = array<i32: 0>} : vector<8x1xi32>
      %20 = vector.broadcast %18 : i32 to vector<8x1xi32>
      %21 = arith.addi %20, %19 : vector<8x1xi32>
      %c4_i32 = arith.constant 4 : i32
      %22 = vector.broadcast %c4_i32 : i32 to vector<8x1xi32>
      %23 = arith.cmpi slt, %21, %22 : vector<8x1xi32>
      %cst = arith.constant 0.000000e+00 : f32
      %24 = vector.shape_cast %23 : vector<8x1xi1> to vector<8x1xi1>
      %25 = vector.broadcast %24 : vector<8x1xi1> to vector<8x128xi1>
      %26 = vector.broadcast %cst : f32 to vector<8x128xf32>
      %27 = arith.select %25, %6, %26 : vector<8x128xi1>, vector<8x128xf32>
      %c0_10 = arith.constant 0 : index
      %c0_11 = arith.constant 0 : index
      %28 = vector.load %arg6[%c0_10, %c0_11] : memref<8x128xf32, #tpu.memory_space<vmem>>, vector<8x128xf32>
      %29 = vector.shape_cast %27 : vector<8x128xf32> to vector<1x8x128xf32>
      %cst_12 = arith.constant dense<0.000000e+00> : vector<8x128xf32>
      %30 = vector.multi_reduction <add>, %29, %cst_12 [0] : vector<1x8x128xf32> to vector<8x128xf32>
      %31 = arith.addf %28, %30 : vector<8x128xf32>
      %c0_13 = arith.constant 0 : index
      %c0_14 = arith.constant 0 : index
      %32 = vector.load %arg6[%c0_13, %c0_14] : memref<8x128xf32, #tpu.memory_space<vmem>>, vector<8x128xf32>
      tpu.vector_store %arg6[%c0_13, %c0_14], %31 {strides = array<i32>} : memref<8x128xf32, #tpu.memory_space<vmem>>, vector<8x128xf32>,
    } else {
    }
    %c0_i32_6 = arith.constant 0 : i32
    %12 = arith.cmpi slt, %8, %c0_i32_6 : i32
    %13 = arith.extui %12 : i1 to i32
    %c0_i32_7 = arith.constant 0 : i32
    %14 = arith.cmpi ne, %13, %c0_i32_7 : i32
    scf.if %14 {
      %c0_10 = arith.constant 0 : index
      %c0_11 = arith.constant 0 : index
      %18 = vector.load %arg6[%c0_10, %c0_11] : memref<8x128xf32, #tpu.memory_space<vmem>>, vector<8x128xf32>
      %19 = vector.shape_cast %6 : vector<8x128xf32> to vector<1x8x128xf32>
      %cst = arith.constant dense<0.000000e+00> : vector<8x128xf32>
      %20 = vector.multi_reduction <add>, %19, %cst [0] : vector<1x8x128xf32> to vector<8x128xf32>
      %21 = arith.addf %18, %20 : vector<8x128xf32>
      %c0_12 = arith.constant 0 : index
      %c0_13 = arith.constant 0 : index
      %22 = vector.load %arg6[%c0_12, %c0_13] : memref<8x128xf32, #tpu.memory_space<vmem>>, vector<8x128xf32>
      tpu.vector_store %arg6[%c0_12, %c0_13], %21 {strides = array<i32>} : memref<8x128xf32, #tpu.memory_space<vmem>>, vector<8x128xf32>,
    } else {
    }
    %c0_i32_8 = arith.constant 0 : i32
    %15 = arith.cmpi eq, %arg1, %c0_i32_8 : i32
    %16 = arith.extui %15 : i1 to i32
    %c0_i32_9 = arith.constant 0 : i32
    %17 = arith.cmpi ne, %16, %c0_i32_9 : i32
    scf.if %17 {
      %c0_10 = arith.constant 0 : index
      %c0_11 = arith.constant 0 : index
      %18 = vector.load %arg6[%c0_10, %c0_11] : memref<8x128xf32, #tpu.memory_space<vmem>>, vector<8x128xf32>
      %c0_12 = arith.constant 0 : index
      %c0_13 = arith.constant 0 : index
      %19 = vector.load %arg4[%c0_12, %c0_13] : memref<1x128xf32, #tpu.memory_space<vmem>>, vector<1x128xf32>
      %20 = vector.broadcast %19 : vector<1x128xf32> to vector<8x128xf32>
      %21 = arith.mulf %18, %20 : vector<8x128xf32>
      %22 = vector.shape_cast %21 : vector<8x128xf32> to vector<1x8x128xf32>
      %cst = arith.constant dense<0.000000e+00> : vector<1xf32>
      %23 = vector.multi_reduction <add>, %22, %cst [1, 2] : vector<1x8x128xf32> to vector<1xf32>
      %24 = vector.shape_cast %23 : vector<1xf32> to vector<1x1x1xf32>
      %25 = vector.extract %24[0, 0, 0] : f32 from vector<1x1x1xf32>
      %26 = vector.broadcast %25 : f32 to vector<1x8x128xf32>
      %c0_14 = arith.constant 0 : index
      %c0_15 = arith.constant 0 : index
      %c0_16 = arith.constant 0 : index
      %27 = vector.load %arg5[%c0_14, %c0_15, %c0_16] : memref<1x8x128xf32, #tpu.memory_space<vmem>>, vector<1x8x128xf32>
      tpu.vector_store %arg5[%c0_14, %c0_15, %c0_16], %26 {strides = array<i32>} : memref<1x8x128xf32, #tpu.memory_space<vmem>>, vector<1x8x128xf32>,
    } else {
    }
    return
  }
  func.func @transform_0(%arg0: i32, %arg1: i32) -> (i32, i32) {
    %c1_i32 = arith.constant 1 : i32
    %0 = arith.muli %arg0, %c1_i32 : i32
    %1 = arith.addi %0, %arg1 : i32
    %c0_i32 = arith.constant 0 : i32
    %2 = arith.minsi %1, %c0_i32 : i32
    %c0_i32_0 = arith.constant 0 : i32
    %c0_i32_1 = arith.constant 0 : i32
    return %2, %c0_i32_0 : i32, i32
  }
  func.func @transform_1(%arg0: i32, %arg1: i32) -> (i32, i32) {
    %c1_i32 = arith.constant 1 : i32
    %0 = arith.muli %arg0, %c1_i32 : i32
    %1 = arith.addi %0, %arg1 : i32
    %c0_i32 = arith.constant 0 : i32
    %2 = arith.minsi %1, %c0_i32 : i32
    %c0_i32_0 = arith.constant 0 : i32
    %c0_i32_1 = arith.constant 0 : i32
    return %2, %c0_i32_0 : i32, i32
  }
  func.func @transform_2(%arg0: i32, %arg1: i32) -> (i32, i32) {
    %c0_i32 = arith.constant 0 : i32
    %c0_i32_0 = arith.constant 0 : i32
    %c0_i32_1 = arith.constant 0 : i32
    return %c0_i32, %c0_i32_0 : i32, i32
  }
  func.func @transform_3(%arg0: i32, %arg1: i32) -> (i32, i32, i32) {
    %c0_i32 = arith.constant 0 : i32
    %c0_i32_0 = arith.constant 0 : i32
    %c0_i32_1 = arith.constant 0 : i32
    return %arg0, %c0_i32, %c0_i32_0 : i32, i32, i32
  }
}

</mosaic_0001>

<bundles_post_ra>
// kernel: _dimred_mse_pallas.1
= control target key start
LH: loop header
LB: loop body
LE: loop exit
PB: predicated region body
PF: predicated region fallthrough
CT: control target
= control target key end

     0   :  { %v113_v0 = vlaneseq  ;;  %s207_s0 = inlined_call_operand.vmem [shape: f32[4,128], index: 0, kind: input, shape index: {}]   ;;  %s208_s1 = inlined_call_operand.vmem [shape: f32[4,128], index: 1, kind: input, shape index: {}]   ;;  %s209_s2 = inlined_call_operand.vmem [shape: f32[1,128], index: 2, kind: input, shape index: {}]   ;;  %s210_s3 = inlined_call_operand.vmem [shape: f32[1,8,128], index: 3, kind: output, shape index: {}]  }
   0x1   :  { %v103_v1 = vld [vmem:[%s207_s0] sm:$0xff] }
   0x2   :  { %v104_v2 = vld [vmem:[%s208_s1] sm:$0xff]  ;;  %v114_v4 = vshrl.u32 %v113_v0, 7 }
   0x3   :  { %v105_v3 = vsub.f32 %v103_v1, %v104_v2  ;;  %v172_v6 = vld [vmem:[%s209_s2] ss:$0 sm:$0xff] }
   0x4   :  { %vm117_vm0 = vcmp.lt.s32.totalorder %v114_v4, 4 }
   0x5   :  { %v106_v5 = vmul.f32 %v105_v3, %v105_v3 }
   0x7   :  { %v120_v7 = vsel %vm117_vm0, %v106_v5, 0.0 }
   0x8   :  { %v144_v8 = vmul.f32 %v172_v6, %v120_v7 }
   0xa   :  { %145 = vadd.xlane.f32.xlu0 %v144_v8 }
  0x93   :  { %v146_v9 = vpop.xlane.xlu0 %145 }
  0x94   :  { %v147_v10 = vrot.slane %v146_v9, 4 }
  0x96   :  { %v148_v11 = vadd.f32 %v147_v10, %v146_v9 }
  0x98   :  { %v149_v12 = vrot.slane %v148_v11, 2 }
  0x9a   :  { %v150_v13 = vadd.f32 %v149_v12, %v148_v11 }
  0x9c   :  { %v151_v14 = vrot.slane %v150_v13, 1 }
  0x9e   :  { %v152_v15 = vadd.f32 %v151_v14, %v150_v13 }
  0xa0   :  { %173 = vpush %v152_v15 }
  0xd1   :  { %s174_s0 = spop %173 }
  0xd2   :  { %v154_v16 = vstv %s174_s0 }
  0xd3   :  { %155 = vst [vmem:[%s210_s3] sm:$0xff] %v154_v16 }

</bundles_post_ra>
